<compile_context>
chip_gen: v7x
topology: tpu7x:2x2x1
jax: 0.10.0
libtpu: 0.0.40
codegen_flags: <defaults>
</compile_context>

<pallas_src>
import jax
import jax.numpy as jnp
from jax.experimental import pallas as pl
from jax.experimental.pallas import tpu as pltpu


LANE = 128


def _round_up(x, m):
    return (x + m - 1) // m * m


# ----------------------------------------------------------------------------
# Configuration (small synthetic shapes)
# ----------------------------------------------------------------------------
BATCH = 2
IMG_C, IMG_H, IMG_W = 4, 16, 16
SEQ_LEN = 8
N_TOKENS = 8          # vision feature token count (3D hooked feature)
D_VISION = 32         # visionParameter.inFeatures
D_LANGUAGE = 32       # languageParameter.inFeatures
NUM_CLASSES = 8       # datasetInfo.numClasses


# ----------------------------------------------------------------------------
# Tile / VMEM sizing helpers (per TPU generation)
# ----------------------------------------------------------------------------
def _pick_vmem_limit_bytes():
    # v7x has 64 MiB physical VMEM per TC, v5e/v6e have 128 MiB; the scoped
    # defaults (16/32 MiB) throttle tile size for this DMA-bound kernel, so
    # raise the limit explicitly and keep ~25% headroom for compiler scratch.
    try:
        cap = pltpu.get_tpu_info().vmem_capacity_bytes
    except Exception:
        cap = 128 * 1024 * 1024
    return min(96 * 1024 * 1024, (cap // 4) * 3)


def _pick_batch_tile(B, N, Dv, vmem_limit_bytes):
    # The (TB, N, Dv) bf16 vision stream (2-deep pipeline buffering) dominates
    # VMEM; budget ~half the scoped limit for it, leaving the rest for the
    # resident fc weight, language/output tiles and headroom.  At the real
    # backbone shapes (N~49, Dv=2048) this lands around TB~96 under v7x's
    # 64 MiB VMEM and considerably larger on v5e/v6e.
    vision_budget = vmem_limit_bytes // 2
    tb = vision_budget // (N * Dv * 2 * 2)          # bf16 bytes * double buffer
    tb = max(16, (tb // 16) * 16)                   # bf16 sublane packing (MXU LHS)
    if B >= 32:
        # keep >= 2 grid steps so dimension_semantics=("parallel",) can shard
        # the batch loop across both v7x TensorCores (grid of 1 idles one TC)
        tb = min(tb, max(16, ((B // 2) // 16) * 16))
    return min(tb, B)


# ----------------------------------------------------------------------------
# Pallas kernel: EFCMF fusion + fc head (one batch tile per grid step)
# ----------------------------------------------------------------------------
def efcmf_fusion_kernel(v3_ref, l_ref, w_ref, b_ref, out_ref):
    # v3_ref : (TB, N, Dv)   hooked 3D vision feature tile, bf16 stream
    # l_ref  : (TB, Dl)      language feature tile, f32
    # w_ref  : (Dv+Dl, Cp)   fused fc weight, bf16 (vision rows pre-scaled 1/N)
    # b_ref  : (1, Cp)       fc bias, f32, zero-padded to Cp lanes
    # out_ref: (TB, Cp)      lane-dense logits tile (padded class dim)
    dv = v3_ref.shape[2]

    # visionFeature.mean(dim=1): 1/N is folded into w_ref's vision rows, so a
    # plain sublane-axis sum suffices; accumulate straight to f32 without
    # materializing an f32 copy of the whole (TB, N, Dv) block.
    vf = jnp.sum(v3_ref[...], axis=1, dtype=jnp.float32)             # (TB, Dv)
    lf = l_ref[...]                                                   # (TB, Dl)

    # Eval mode: getFeatureDropMask -> ones, nn.Dropout -> identity; both are
    # elided at trace time rather than materialized as mask inputs.
    # ConcatNeck + nn.Linear(Dv+Dl, C) as TWO accumulated MXU dots against
    # static views of the fused weight (no (TB, Dv+Dl) concat copy/relayout).
    acc = jnp.dot(vf.astype(jnp.bfloat16), w_ref[:dv, :],
                  preferred_element_type=jnp.float32)                 # (TB, Cp)
    acc = acc + jnp.dot(lf.astype(jnp.bfloat16), w_ref[dv:, :],
                        preferred_element_type=jnp.float32)
    out_ref[...] = (acc + b_ref[...]).astype(out_ref.dtype)


def efcmf_fusion(vision_feat_3d, language_feat, w_vision, w_language, bias,
                 *, batch_tile=None):
    B, N, Dv = vision_feat_3d.shape
    Dl = language_feat.shape[1]
    C = w_vision.shape[1]

    vmem_limit = _pick_vmem_limit_bytes()
    TB = batch_tile if batch_tile is not None else _pick_batch_tile(
        B, N, Dv, vmem_limit)
    num_blocks = pl.cdiv(B, TB)   # no HBM-side jnp.pad of the vision stream

    # --- weight prep (trace time) -------------------------------------------
    # Fold 1/N (token mean) into the vision rows, fuse the two weight slices,
    # zero-pad classes to a lane-dense multiple of 128, cast to bf16.
    Cp = max(LANE, _round_up(C, LANE))
    w_fused = jnp.concatenate([w_vision / float(N), w_language], axis=0)  # (Dv+Dl, C)
    w_fused = jnp.pad(w_fused, ((0, 0), (0, Cp - C))).astype(jnp.bfloat16)
    b_pad = jnp.pad(bias.reshape(1, C).astype(jnp.float32),
                    ((0, 0), (0, Cp - C)))

    # Stream the dominant (B, N, Dv) input in bf16: halves HBM->VMEM bytes on
    # the DMA-bound path and halves the double-buffered VMEM footprint.
    v_bf16 = vision_feat_3d.astype(jnp.bfloat16)
    l_f32 = language_feat.astype(jnp.float32)

    def call(single_buffer_consts):
        # Grid-invariant weight/bias: request single buffering to reclaim one
        # resident VMEM copy (matters most under v7x's 64 MiB budget).
        const_kw = ({"pipeline_mode": pl.Buffered(1)}
                    if single_buffer_consts else {})
        fn = pl.pallas_call(
            efcmf_fusion_kernel,
            out_shape=jax.ShapeDtypeStruct((B, Cp), jnp.float32),
            grid=(num_blocks,),
            in_specs=[
                pl.BlockSpec((TB, N, Dv), lambda i: (i, 0, 0)),
                pl.BlockSpec((TB, Dl), lambda i: (i, 0)),
                pl.BlockSpec((Dv + Dl, Cp), lambda i: (0, 0), **const_kw),
                pl.BlockSpec((1, Cp), lambda i: (0, 0), **const_kw),
            ],
            out_specs=pl.BlockSpec((TB, Cp), lambda i: (i, 0)),
            compiler_params=pltpu.CompilerParams(
                dimension_semantics=("parallel",),   # shard batch across TCs
                vmem_limit_bytes=vmem_limit,
            ),
        )
        return fn(v_bf16, l_f32, w_fused, b_pad)

    try:
        out = jax.block_until_ready(call(True))
    except Exception:
        # TODO(synk): pipeline_mode=pl.Buffered(1) on grid-invariant blocks is
        # not supported by this Pallas version; default double buffering used.
        out = jax.block_until_ready(call(False))

    # Strip the lane padding of the class dim outside the kernel.
    return out[:, :C]


# ----------------------------------------------------------------------------
# Glue: synthetic backbone stubs (plain JAX)
# ----------------------------------------------------------------------------
# TODO(synk): the real vision/language backbones (timm resnet101 with a forward
# hook on 'backbone.registerModel.norm', TextCNN hooked at 'dropout') are
# external sub-models; they are replaced by deterministic linear feature
# extractors producing the same output shapes.
def vision_backbone_stub(image, w):          # image: (B, Cin, H, W) NCHW
    B = image.shape[0]
    flat = image.reshape(B, -1)              # (B, Cin*H*W)
    feat = flat @ w                          # (B, N*Dv)
    return feat.reshape(B, N_TOKENS, D_VISION)


def language_backbone_stub(mask, w):         # mask: (B, L) token/text input
    return mask @ w                          # (B, Dl)


def efcmf_forward(input_dict, params):
    image = input_dict["image"]
    mask = input_dict["mask"]

    # Eval mode: dropInput=False / dropFeature=False -> all drop masks are ones
    # and nn.Dropout is identity; they are elided at trace time.
    # TODO(synk): training-time pseudoRandom balanced feature drop (p, q) uses
    # python random.shuffle and is not reproduced (forward is eval mode).
    vision_feat_3d = vision_backbone_stub(image, params["w_vis_backbone"])
    language_feat = language_backbone_stub(mask, params["w_lang_backbone"])

    logits = efcmf_fusion(vision_feat_3d, language_feat,
                          params["fc_w_vision"], params["fc_w_language"],
                          params["fc_bias"])
    return {"cls": logits}


if __name__ == "__main__":
    key = jax.random.PRNGKey(0)
    k_img, k_msk, k_wv, k_wl, k_fcw, k_fcb = jax.random.split(key, 6)

    image = jax.random.normal(k_img, (BATCH, IMG_C, IMG_H, IMG_W), jnp.float32)
    text_mask = jax.random.normal(k_msk, (BATCH, SEQ_LEN), jnp.float32)

    params = {
        "w_vis_backbone": jax.random.normal(
            k_wv, (IMG_C * IMG_H * IMG_W, N_TOKENS * D_VISION), jnp.float32) * 0.02,
        "w_lang_backbone": jax.random.normal(
            k_wl, (SEQ_LEN, D_LANGUAGE), jnp.float32) * 0.1,
        # nn.Linear(Dv+Dl, numClasses) weight, stored transposed and split:
        "fc_w_vision": jax.random.normal(
            k_fcw, (D_VISION, NUM_CLASSES), jnp.float32) * 0.05,
        "fc_w_language": jax.random.normal(
            jax.random.fold_in(k_fcw, 1), (D_LANGUAGE, NUM_CLASSES), jnp.float32) * 0.05,
        "fc_bias": jax.random.normal(k_fcb, (NUM_CLASSES,), jnp.float32) * 0.01,
    }

    out = efcmf_forward({"image": image, "mask": text_mask}, params)
    logits = jax.block_until_ready(out["cls"])

    # Pure-JAX f32 reference of the fused path.
    vf3 = vision_backbone_stub(image, params["w_vis_backbone"])
    lf = language_backbone_stub(text_mask, params["w_lang_backbone"])
    fusion = jnp.concatenate([vf3.mean(axis=1), lf], axis=-1)
    ref = fusion @ jnp.concatenate(
        [params["fc_w_vision"], params["fc_w_language"]], axis=0) + params["fc_bias"]

    assert logits.shape == (BATCH, NUM_CLASSES)
    # Kernel streams bf16 activations and uses bf16 MXU operands (f32
    # accumulate) -> relaxed tolerance vs. the pure-f32 reference.
    assert jnp.allclose(logits, ref, atol=2e-2, rtol=2e-2), (
        f"max abs err {jnp.max(jnp.abs(logits - ref))}")

    print("KERNEL_OK")
</pallas_src>

<mosaic_0001>
module attributes {stable_mosaic.version = 11 : i64} {
  func.func @efcmf_fusion_kernel(%arg0: i32, %arg1: memref<2x8x32xbf16, #tpu.memory_space<vmem>>, %arg2: memref<2x32xf32, #tpu.memory_space<vmem>>, %arg3: memref<64x128xbf16, #tpu.memory_space<vmem>>, %arg4: memref<1x128xf32, #tpu.memory_space<vmem>>, %arg5: memref<2x128xf32, #tpu.memory_space<vmem>>) attributes {dimension_semantics = [#tpu.dimension_semantics<parallel>], iteration_bounds = array<i64: 1>, scalar_prefetch = 0 : i64, scratch_operands = 0 : i64, tpu.core_type = #tpu.core_type<tc>, window_params = [{transform_indices = @transform_0, window_bounds = array<i64: 2, 8, 32>}, {transform_indices = @transform_1, window_bounds = array<i64: 2, 32>}, {pipeline_mode = #tpu.pipeline_mode<synchronous>, transform_indices = @transform_2, window_bounds = array<i64: 64, 128>}, {pipeline_mode = #tpu.pipeline_mode<synchronous>, transform_indices = @transform_3, window_bounds = array<i64: 1, 128>}, {transform_indices = @transform_4, window_bounds = array<i64: 2, 128>}]} {
    %c0 = arith.constant 0 : index
    %c0_0 = arith.constant 0 : index
    %c0_1 = arith.constant 0 : index
    %0 = vector.load %arg1[%c0, %c0_0, %c0_1] : memref<2x8x32xbf16, #tpu.memory_space<vmem>>, vector<2x8x32xbf16>
    %1 = arith.extf %0 : vector<2x8x32xbf16> to vector<2x8x32xf32>
    %cst = arith.constant dense<0.000000e+00> : vector<2x32xf32>
    %2 = vector.multi_reduction <add>, %1, %cst [1] : vector<2x8x32xf32> to vector<2x32xf32>
    %c0_2 = arith.constant 0 : index
    %c0_3 = arith.constant 0 : index
    %3 = vector.load %arg2[%c0_2, %c0_3] : memref<2x32xf32, #tpu.memory_space<vmem>>, vector<2x32xf32>
    %4 = arith.truncf %2 : vector<2x32xf32> to vector<2x32xbf16>
    %c0_4 = arith.constant 0 : index
    %c0_5 = arith.constant 0 : index
    %5 = vector.load %arg3[%c0_4, %c0_5] : memref<64x128xbf16, #tpu.memory_space<vmem>>, vector<32x128xbf16>
    %cst_6 = arith.constant dense<0.000000e+00> : vector<2x128xf32>
    %6 = tpu.matmul %4, %5, %cst_6 {dimension_numbers = #tpu.dot_dimension_numbers<[1], [0], [0], [1], [0, 0, 1, 1], [], []>} : vector<2x32xbf16>, vector<32x128xbf16>, vector<2x128xf32> -> vector<2x128xf32>
    %7 = arith.truncf %3 : vector<2x32xf32> to vector<2x32xbf16>
    %c32 = arith.constant 32 : index
    %c0_7 = arith.constant 0 : index
    %8 = vector.load %arg3[%c32, %c0_7] : memref<64x128xbf16, #tpu.memory_space<vmem>>, vector<32x128xbf16>
    %cst_8 = arith.constant dense<0.000000e+00> : vector<2x128xf32>
    %9 = tpu.matmul %7, %8, %cst_8 {dimension_numbers = #tpu.dot_dimension_numbers<[1], [0], [0], [1], [0, 0, 1, 1], [], []>} : vector<2x32xbf16>, vector<32x128xbf16>, vector<2x128xf32> -> vector<2x128xf32>
    %10 = arith.addf %6, %9 : vector<2x128xf32>
    %c0_9 = arith.constant 0 : index
    %c0_10 = arith.constant 0 : index
    %11 = vector.load %arg4[%c0_9, %c0_10] : memref<1x128xf32, #tpu.memory_space<vmem>>, vector<1x128xf32>
    %12 = vector.broadcast %11 : vector<1x128xf32> to vector<2x128xf32>
    %13 = arith.addf %10, %12 : vector<2x128xf32>
    %c0_11 = arith.constant 0 : index
    %c0_12 = arith.constant 0 : index
    %14 = vector.load %arg5[%c0_11, %c0_12] : memref<2x128xf32, #tpu.memory_space<vmem>>, vector<2x128xf32>
    tpu.vector_store %arg5[%c0_11, %c0_12], %13 {strides = array<i32>} : memref<2x128xf32, #tpu.memory_space<vmem>>, vector<2x128xf32>,
    return
  }
  func.func @transform_0(%arg0: i32) -> (i32, i32, i32) {
    %c0_i32 = arith.constant 0 : i32
    %c0_i32_0 = arith.constant 0 : i32
    %c0_i32_1 = arith.constant 0 : i32
    return %arg0, %c0_i32, %c0_i32_0 : i32, i32, i32
  }
  func.func @transform_1(%arg0: i32) -> (i32, i32) {
    %c0_i32 = arith.constant 0 : i32
    %c0_i32_0 = arith.constant 0 : i32
    return %arg0, %c0_i32 : i32, i32
  }
  func.func @transform_2(%arg0: i32) -> (i32, i32) {
    %c0_i32 = arith.constant 0 : i32
    %c0_i32_0 = arith.constant 0 : i32
    %c0_i32_1 = arith.constant 0 : i32
    return %c0_i32, %c0_i32_0 : i32, i32
  }
  func.func @transform_3(%arg0: i32) -> (i32, i32) {
    %c0_i32 = arith.constant 0 : i32
    %c0_i32_0 = arith.constant 0 : i32
    %c0_i32_1 = arith.constant 0 : i32
    return %c0_i32, %c0_i32_0 : i32, i32
  }
  func.func @transform_4(%arg0: i32) -> (i32, i32) {
    %c0_i32 = arith.constant 0 : i32
    %c0_i32_0 = arith.constant 0 : i32
    return %arg0, %c0_i32 : i32, i32
  }
}

module attributes {stable_mosaic.version = 11 : i64} {
  func.func @efcmf_fusion_kernel(%arg0: i32, %arg1: memref<2x8x32xbf16, #tpu.memory_space<vmem>>, %arg2: memref<2x32xf32, #tpu.memory_space<vmem>>, %arg3: memref<64x128xbf16, #tpu.memory_space<vmem>>, %arg4: memref<1x128xf32, #tpu.memory_space<vmem>>, %arg5: memref<2x128xf32, #tpu.memory_space<vmem>>) attributes {dimension_semantics = [#tpu.dimension_semantics<parallel>], iteration_bounds = array<i64: 1>, scalar_prefetch = 0 : i64, scratch_operands = 0 : i64, tpu.core_type = #tpu.core_type<tc>, window_params = [{transform_indices = @transform_0, window_bounds = array<i64: 2, 8, 32>}, {transform_indices = @transform_1, window_bounds = array<i64: 2, 32>}, {pipeline_mode = #tpu.pipeline_mode<synchronous>, transform_indices = @transform_2, window_bounds = array<i64: 64, 128>}, {pipeline_mode = #tpu.pipeline_mode<synchronous>, transform_indices = @transform_3, window_bounds = array<i64: 1, 128>}, {transform_indices = @transform_4, window_bounds = array<i64: 2, 128>}]} {
    %c0 = arith.constant 0 : index
    %c0_0 = arith.constant 0 : index
    %c0_1 = arith.constant 0 : index
    %0 = vector.load %arg1[%c0, %c0_0, %c0_1] : memref<2x8x32xbf16, #tpu.memory_space<vmem>>, vector<2x8x32xbf16>
    %1 = arith.extf %0 : vector<2x8x32xbf16> to vector<2x8x32xf32>
    %cst = arith.constant dense<0.000000e+00> : vector<2x32xf32>
    %2 = vector.multi_reduction <add>, %1, %cst [1] : vector<2x8x32xf32> to vector<2x32xf32>
    %c0_2 = arith.constant 0 : index
    %c0_3 = arith.constant 0 : index
    %3 = vector.load %arg2[%c0_2, %c0_3] : memref<2x32xf32, #tpu.memory_space<vmem>>, vector<2x32xf32>
    %4 = arith.truncf %2 : vector<2x32xf32> to vector<2x32xbf16>
    %c0_4 = arith.constant 0 : index
    %c0_5 = arith.constant 0 : index
    %5 = vector.load %arg3[%c0_4, %c0_5] : memref<64x128xbf16, #tpu.memory_space<vmem>>, vector<32x128xbf16>
    %cst_6 = arith.constant dense<0.000000e+00> : vector<2x128xf32>
    %6 = tpu.matmul %4, %5, %cst_6 {dimension_numbers = #tpu.dot_dimension_numbers<[1], [0], [0], [1], [0, 0, 1, 1], [], []>} : vector<2x32xbf16>, vector<32x128xbf16>, vector<2x128xf32> -> vector<2x128xf32>
    %7 = arith.truncf %3 : vector<2x32xf32> to vector<2x32xbf16>
    %c32 = arith.constant 32 : index
    %c0_7 = arith.constant 0 : index
    %8 = vector.load %arg3[%c32, %c0_7] : memref<64x128xbf16, #tpu.memory_space<vmem>>, vector<32x128xbf16>
    %cst_8 = arith.constant dense<0.000000e+00> : vector<2x128xf32>
    %9 = tpu.matmul %7, %8, %cst_8 {dimension_numbers = #tpu.dot_dimension_numbers<[1], [0], [0], [1], [0, 0, 1, 1], [], []>} : vector<2x32xbf16>, vector<32x128xbf16>, vector<2x128xf32> -> vector<2x128xf32>
    %10 = arith.addf %6, %9 : vector<2x128xf32>
    %c0_9 = arith.constant 0 : index
    %c0_10 = arith.constant 0 : index
    %11 = vector.load %arg4[%c0_9, %c0_10] : memref<1x128xf32, #tpu.memory_space<vmem>>, vector<1x128xf32>
    %12 = vector.broadcast %11 : vector<1x128xf32> to vector<2x128xf32>
    %13 = arith.addf %10, %12 : vector<2x128xf32>
    %c0_11 = arith.constant 0 : index
    %c0_12 = arith.constant 0 : index
    %14 = vector.load %arg5[%c0_11, %c0_12] : memref<2x128xf32, #tpu.memory_space<vmem>>, vector<2x128xf32>
    tpu.vector_store %arg5[%c0_11, %c0_12], %13 {strides = array<i32>} : memref<2x128xf32, #tpu.memory_space<vmem>>, vector<2x128xf32>,
    return
  }
  func.func @transform_0(%arg0: i32) -> (i32, i32, i32) {
    %c0_i32 = arith.constant 0 : i32
    %c0_i32_0 = arith.constant 0 : i32
    %c0_i32_1 = arith.constant 0 : i32
    return %arg0, %c0_i32, %c0_i32_0 : i32, i32, i32
  }
  func.func @transform_1(%arg0: i32) -> (i32, i32) {
    %c0_i32 = arith.constant 0 : i32
    %c0_i32_0 = arith.constant 0 : i32
    return %arg0, %c0_i32 : i32, i32
  }
  func.func @transform_2(%arg0: i32) -> (i32, i32) {
    %c0_i32 = arith.constant 0 : i32
    %c0_i32_0 = arith.constant 0 : i32
    %c0_i32_1 = arith.constant 0 : i32
    return %c0_i32, %c0_i32_0 : i32, i32
  }
  func.func @transform_3(%arg0: i32) -> (i32, i32) {
    %c0_i32 = arith.constant 0 : i32
    %c0_i32_0 = arith.constant 0 : i32
    %c0_i32_1 = arith.constant 0 : i32
    return %c0_i32, %c0_i32_0 : i32, i32
  }
  func.func @transform_4(%arg0: i32) -> (i32, i32) {
    %c0_i32 = arith.constant 0 : i32
    %c0_i32_0 = arith.constant 0 : i32
    return %arg0, %c0_i32 : i32, i32
  }
}

</mosaic_0001>

<bundles_post_ra>
// kernel: tpu_custom_call.1
= control target key start
LH: loop header
LB: loop body
LE: loop exit
PB: predicated region body
PF: predicated region fallthrough
CT: control target
= control target key end

     0   :  { %9 = vsyncpa [#allocation3], 0  ;;  %s513_s0 = inlined_call_operand.hbm [shape: bf16[2,8,32], index: 0, kind: input, shape index: {}]   ;;  %s514_s1 = inlined_call_operand.hbm [shape: f32[2,32], index: 1, kind: input, shape index: {}]   ;;  %s515_s2 = inlined_call_operand.hbm [shape: bf16[64,128], index: 2, kind: input, shape index: {}]   ;;  %s516_s3 = inlined_call_operand.hbm [shape: f32[1,128], index: 3, kind: input, shape index: {}]   ;;  %s517_s4 = inlined_call_operand.hbm [shape: f32[2,128], index: 4, kind: output, shape index: {}]  }
   0x1   :  { %10 = vsyncpa [#allocation6], 0 }
   0x2   :  { %11 = vsyncpa [#allocation9], 0 }
   0x3   :  { %12 = vsyncpa [#allocation4], 0  ;;  %s408_s15 = smov [#allocation5]   ;;  %s409_s17 = smov [#allocation2]  }
   0x4   :  { %s31_s16 = sshll.u32 %s408_s15, 4  ;;  %s18_s18 = sshll.u32 %s409_s17, 4  ;;  %s32_s16 = int_to_ptr.vmem [resolvable:$true] %s31_s16  ;;  %s442_s18 = int_to_ptr.vmem [resolvable:$true] %s18_s18 }
   0x5   :  { %s290_s21 = scalar_lea.hbm %s514_s1, 32 }
   0x6   :  { %p291_p0 = scmp.ne.s32.totalorder %s514_s1, %s290_s21  ;;  %p294_p1 = scmp.lt.u32.totalorder %s290_s21, %s514_s1 }
   0x8   :  { %p296_p2 = pnand %p294_p1, %p291_p0 }
   0xa   :  { %299 = shalt.err (!%p296_p2)
}
   0xb   :  { %s300_s26 = scalar_lea.vmem %s32_s16, 32  ;;  %p305_p4 = scmp.lt.s32.totalorder %s32_s16, %s32_s16 }
   0xc   :  { %p301_p3 = scmp.ne.s32.totalorder %s32_s16, %s300_s26  ;;  %p306_p5 = scmp.lt.s32.totalorder %s300_s26, %s300_s26 }
   0xe   :  { %p307_p6 = por %p306_p5, %p305_p4 }
  0x10   :  { %p308_p7 = pnand %p307_p6, %p301_p3 }
  0x12   :  { %311 = shalt.err (!%p308_p7)
}
  0x13   :  { %34 = dma.hbm_to_vmem [thread:$0]  %s514_s1, 32, %s32_s16, [#allocation6]  }
  0x14   :  { %s312_s5 = scalar_lea.hbm %s513_s0, 128 }
  0x15   :  { %p313_p8 = scmp.ne.s32.totalorder %s513_s0, %s312_s5  ;;  %p316_p9 = scmp.lt.u32.totalorder %s312_s5, %s513_s0 }
  0x17   :  { %p318_p10 = pnand %p316_p9, %p313_p8 }
  0x19   :  { %321 = shalt.err (!%p318_p10)
}
  0x1a   :  { %s322_s10 = scalar_lea.vmem %s442_s18, 128  ;;  %p327_p12 = scmp.lt.s32.totalorder %s442_s18, %s442_s18 }
  0x1b   :  { %p323_p11 = scmp.ne.s32.totalorder %s442_s18, %s322_s10  ;;  %p328_p13 = scmp.lt.s32.totalorder %s322_s10, %s322_s10 }
  0x1d   :  { %p329_p0 = por %p328_p13, %p327_p12 }
  0x1f   :  { %p330_p1 = pnand %p329_p0, %p323_p11 }
  0x21   :  { %333 = shalt.err (!%p330_p1)
}
  0x22   :  { %s410_s1 = smov 64   ;;  %s411_s11 = smov 4  }
  0x23   :  { %24 = dma.hbm_to_vmem [thread:$0]  %s513_s0, 128, %s442_s18, [#allocation3], %s410_s1, %s410_s1, %s411_s11  }
  0x24   :  { %s412_s14 = smov [#allocation7]   ;;  %s413_s16 = smov [#allocation8]  }
  0x25   :  { %s40_s15 = sshll.u32 %s412_s14, 4  ;;  %s53_s17 = sshll.u32 %s413_s16, 4  ;;  %s41_s15 = int_to_ptr.vmem [resolvable:$true] %s40_s15  ;;  %s54_s17 = int_to_ptr.vmem [resolvable:$true] %s53_s17 }
  0x26   :  { %s334_s21 = scalar_lea.hbm %s515_s2, 512 }
  0x27   :  { %p335_p2 = scmp.ne.s32.totalorder %s515_s2, %s334_s21  ;;  %p338_p3 = scmp.lt.u32.totalorder %s334_s21, %s515_s2 }
  0x29   :  { %p340_p4 = pnand %p338_p3, %p335_p2 }
  0x2b   :  { %343 = shalt.err (!%p340_p4)
}
  0x2c   :  { %s344_s0 = scalar_lea.vmem %s41_s15, 512  ;;  %p349_p6 = scmp.lt.s32.totalorder %s41_s15, %s41_s15 }
  0x2d   :  { %p345_p5 = scmp.ne.s32.totalorder %s41_s15, %s344_s0  ;;  %p350_p7 = scmp.lt.s32.totalorder %s344_s0, %s344_s0 }
  0x2f   :  { %p351_p8 = por %p350_p7, %p349_p6 }
  0x31   :  { %p352_p9 = pnand %p351_p8, %p345_p5 }
  0x33   :  { %355 = shalt.err (!%p352_p9)
}
  0x34   :  { %46 = dma.hbm_to_vmem [thread:$0]  %s515_s2, 512, %s41_s15, [#allocation6], %s410_s1, %s410_s1, %s411_s11  }
  0x35   :  { %s356_s29 = scalar_lea.hbm %s516_s3, 16 }
  0x36   :  { %p357_p10 = scmp.ne.s32.totalorder %s516_s3, %s356_s29  ;;  %p360_p11 = scmp.lt.u32.totalorder %s356_s29, %s516_s3 }
  0x38   :  { %p362_p12 = pnand %p360_p11, %p357_p10 }
  0x3a   :  { %365 = shalt.err (!%p362_p12)
}
  0x3b   :  { %s366_s8 = scalar_lea.vmem %s54_s17, 16  ;;  %s370_s9 = scalar_lea.vmem %s54_s17, 32 }
  0x3c   :  { %p367_p13 = scmp.ne.s32.totalorder %s54_s17, %s366_s8  ;;  %p371_p0 = scmp.lt.s32.totalorder %s54_s17, %s54_s17 }
  0x3d   :  { %p372_p1 = scmp.lt.s32.totalorder %s370_s9, %s366_s8 }
  0x3f   :  { %p373_p2 = por %p372_p1, %p371_p0 }
  0x41   :  { %p374_p3 = pnand %p373_p2, %p367_p13 }
  0x43   :  { %377 = shalt.err (!%p374_p3)
}
  0x44   :  { %56 = dma.hbm_to_vmem [thread:$0]  %s516_s3, 16, %s54_s17, [#allocation9]  }
  0x45   :  { %400 = dma.done.wait [#allocation3], 128  }
  0x46   :  { %401 = vsyncadd [#allocation3], 4294967168 }
  0x47   :  { %402 = dma.done.wait [#allocation6], 544  }
  0x48   :  { %403 = vsyncadd [#allocation6], 4294966752 }
  0x49   :  { %404 = dma.done.wait [#allocation9], 16  }
  0x4a   :  { %405 = vsyncadd [#allocation9], 4294967280  ;;  %v414_v0 = vmov 0.0   ;;  %vm415_vm0 = vmmov 0   ;;  %v286_v1 = vld [vmem:[#allocation7 + $0x10] sm:$0xff]   ;;  %v287_v2 = vld [vmem:[#allocation7] sm:$0xff]  }
  0x4b   :  { %261 = vmatprep.subr.bf16.mxu0 %v414_v0  ;;  %269 = vmatprep.subr.bf16.mxu1 %v414_v0  ;;  %v288_v3 = vld [vmem:[#allocation7 + $0x18] sm:$0xff]   ;;  %vm74_vm1 = vcmask 261120   ;;  %v289_v8 = vld [vmem:[#allocation7 + $0x8] sm:$0xff]   ;;  %vm160_vm2 = vcmask 1041409   ;;  %v250_v35 = vld [vmem:[#allocation8] ss:$0 sm:$0xff] }
  0x4c   :  { %265 = vmatprep.mubr.msk.bf16.mxu0 %vm415_vm0, %v414_v0  ;;  %273 = vmatprep.mubr.msk.bf16.mxu1 %vm415_vm0, %v414_v0  ;;  %v252_v4 = vld [vmem:[#allocation2] sm:$0xff]   ;;  %v89_v5 = vld [vmem:[#allocation5] sm:$0x3]  ;;  %s416_s3 = smov [#allocation10]  }
  0x4d   :  { %262 = vmatpush3.bf16.msra.mxu0 %v286_v1  ;;  %270 = vmatpush3.bf16.msra.mxu1 %v287_v2  ;;  %v253_v6 = vunpack.c.l.bf16 %v252_v4  ;;  %v254_v7 = vunpack.c.h.bf16 %v252_v4  ;;  %v96_v9 = vpack.c.bf16 %v89_v5, %v89_v5  ;;  %s233_s1 = sshll.u32 %s416_s3, 4  ;;  %s234_s1 = int_to_ptr.vmem [resolvable:$true] %s233_s1 }
  0x4e   :  { %263 = vmatprep.subr.bf16.mxu0 %v414_v0  ;;  %271 = vmatprep.subr.bf16.mxu1 %v414_v0  ;;  %s378_s11 = scalar_lea.vmem %s234_s1, 32  ;;  %p383_p5 = scmp.lt.s32.totalorder %s234_s1, %s234_s1 }
  0x4f   :  { %v75_v10 = vsel %vm74_vm1, %v253_v6, 0.0  ;;  %v82_v11 = vsel %vm74_vm1, %v254_v7, 0.0  ;;  %p379_p4 = scmp.ne.s32.totalorder %s234_s1, %s378_s11  ;;  %p384_p6 = scmp.lt.s32.totalorder %s378_s11, %s378_s11 }
  0x50   :  { %v76_v12 = vrot.slane %v75_v10, 4  ;;  %v83_v13 = vrot.slane %v82_v11, 4 }
  0x51   :  { %264 = vmatpush3.bf16.msra.mxu0 %v288_v3  ;;  %272 = vmatpush3.bf16.msra.mxu1 %v289_v8  ;;  %p385_p7 = por %p384_p6, %p383_p5 }
  0x52   :  { %v77_v14 = vadd.f32 %v76_v12, %v75_v10  ;;  %v84_v15 = vadd.f32 %v83_v13, %v82_v11 }
  0x53   :  { %p386_p8 = pnand %p385_p7, %p379_p4 }
  0x54   :  { %266 = vmatmul.mubr.msk.bf16.vlgmr.msra.gmra.mrb[0].mxu0 %vm74_vm1, %v96_v9  ;;  %v78_v16 = vrot.slane %v77_v14, 2  ;;  %v85_v17 = vrot.slane %v84_v15, 2 }
  0x56   :  { %v79_v18 = vadd.f32 %v78_v16, %v77_v14  ;;  %v86_v19 = vadd.f32 %v85_v17, %v84_v15 }
  0x58   :  { %v80_v20 = vrot.slane %v79_v18, 1  ;;  %v87_v21 = vrot.slane %v86_v19, 1 }
  0x5a   :  { %v81_v22 = vadd.f32 %v80_v20, %v79_v18  ;;  %v88_v23 = vadd.f32 %v87_v21, %v86_v19 }
  0x5c   :  { %v90_v24 = vpack.c.bf16 %v81_v22, %v81_v22  ;;  %v91_v25 = vpack.c.bf16 %v88_v23, %v88_v23 }
  0x5e   :  { %v158_v26 = vunpack.c.l.b16 %v90_v24  ;;  %v159_v27 = vunpack.c.l.b16 %v91_v25 }
  0x60   :  { %v161_v28 = vsel %vm160_vm2, %v159_v27, %v158_v26 }
  0x61   :  { %v162_v29 = vpack.c.b16 %v161_v28, %v161_v28 }
  0x63   :  { %274 = vmatmul.mubr.msk.bf16.vlgmr.msra.gmra.mrb[0].mxu1 %vm74_vm1, %v162_v29 }
 0x127   :  { %v150_v30 = vpop.f32.mrb[0].mxu0 }
 0x128   :  { %v267_v31 = vpop.f32.mrb[1].mxu0 }
 0x129   :  { %v153_v32 = vpop.f32.mrb[2].mxu0 }
 0x12a   :  { %v268_v33 = vpop.f32.mrb[3].mxu0 }
 0x136   :  { %v212_v34 = vpop.f32.mrb[0].mxu1 }
 0x137   :  { %v213_v36 = vadd.f32 %v212_v34, %v150_v30  ;;  %v275_v37 = vpop.f32.mrb[1].mxu1 }
 0x138   :  { %v215_v38 = vpop.f32.mrb[2].mxu1 }
 0x139   :  { %v225_v39 = vadd.f32 %v250_v35, %v213_v36  ;;  %v276_v40 = vpop.f32.mrb[3].mxu1 }
 0x13b   :  { %226 = vst [vmem:[#allocation10] sm:$0x3] %v225_v39 }
 0x13c   :  { %389 = shalt.err (!%p386_p8)
}
 0x13d   :  { %s390_s14 = scalar_lea.hbm %s517_s4, 32 }
 0x13e   :  { %p391_p9 = scmp.ne.s32.totalorder %s517_s4, %s390_s14  ;;  %p394_p10 = scmp.lt.u32.totalorder %s390_s14, %s517_s4 }
 0x140   :  { %p396_p11 = pnand %p394_p10, %p391_p9 }
 0x142   :  { %399 = shalt.err (!%p396_p11)
}
 0x143   :  { %236 = dma.vmem_to_hbm [thread:$0]  %s234_s1, 32, %s517_s4, [#allocation4]  }
 0x144   :  { %406 = dma.done.wait [#allocation4], 32  }
 0x145   :  { %407 = vsyncadd [#allocation4], 4294967264 }
 0x146   :  { %240 = vsyncpa [#allocation3], 1 }
 0x147   :  { %241 = vsyncpa [#allocation6], 1 }
 0x148   :  { %242 = vsyncpa [#allocation9], 1 }
 0x149   :  { %243 = vsyncpa [#allocation4], 1 }

// kernel: tpu_custom_call.1
= control target key start
LH: loop header
LB: loop body
LE: loop exit
PB: predicated region body
PF: predicated region fallthrough
CT: control target
= control target key end

     0   :  { %9 = vsyncpa [#allocation3], 0  ;;  %s513_s0 = inlined_call_operand.hbm [shape: bf16[2,8,32], index: 0, kind: input, shape index: {}]   ;;  %s514_s1 = inlined_call_operand.hbm [shape: f32[2,32], index: 1, kind: input, shape index: {}]   ;;  %s515_s2 = inlined_call_operand.hbm [shape: bf16[64,128], index: 2, kind: input, shape index: {}]   ;;  %s516_s3 = inlined_call_operand.hbm [shape: f32[1,128], index: 3, kind: input, shape index: {}]   ;;  %s517_s4 = inlined_call_operand.hbm [shape: f32[2,128], index: 4, kind: output, shape index: {}]  }
   0x1   :  { %10 = vsyncpa [#allocation6], 0 }
   0x2   :  { %11 = vsyncpa [#allocation9], 0 }
   0x3   :  { %12 = vsyncpa [#allocation4], 0  ;;  %s408_s15 = smov [#allocation5]   ;;  %s409_s17 = smov [#allocation2]  }
   0x4   :  { %s31_s16 = sshll.u32 %s408_s15, 4  ;;  %s18_s18 = sshll.u32 %s409_s17, 4  ;;  %s32_s16 = int_to_ptr.vmem [resolvable:$true] %s31_s16  ;;  %s442_s18 = int_to_ptr.vmem [resolvable:$true] %s18_s18 }
   0x5   :  { %s290_s21 = scalar_lea.hbm %s514_s1, 32 }
   0x6   :  { %p291_p0 = scmp.ne.s32.totalorder %s514_s1, %s290_s21  ;;  %p294_p1 = scmp.lt.u32.totalorder %s290_s21, %s514_s1 }
   0x8   :  { %p296_p2 = pnand %p294_p1, %p291_p0 }
   0xa   :  { %299 = shalt.err (!%p296_p2)
}
   0xb   :  { %s300_s26 = scalar_lea.vmem %s32_s16, 32  ;;  %p305_p4 = scmp.lt.s32.totalorder %s32_s16, %s32_s16 }
   0xc   :  { %p301_p3 = scmp.ne.s32.totalorder %s32_s16, %s300_s26  ;;  %p306_p5 = scmp.lt.s32.totalorder %s300_s26, %s300_s26 }
   0xe   :  { %p307_p6 = por %p306_p5, %p305_p4 }
  0x10   :  { %p308_p7 = pnand %p307_p6, %p301_p3 }
  0x12   :  { %311 = shalt.err (!%p308_p7)
}
  0x13   :  { %34 = dma.hbm_to_vmem [thread:$0]  %s514_s1, 32, %s32_s16, [#allocation6]  }
  0x14   :  { %s312_s5 = scalar_lea.hbm %s513_s0, 128 }
  0x15   :  { %p313_p8 = scmp.ne.s32.totalorder %s513_s0, %s312_s5  ;;  %p316_p9 = scmp.lt.u32.totalorder %s312_s5, %s513_s0 }
  0x17   :  { %p318_p10 = pnand %p316_p9, %p313_p8 }
  0x19   :  { %321 = shalt.err (!%p318_p10)
}
  0x1a   :  { %s322_s10 = scalar_lea.vmem %s442_s18, 128  ;;  %p327_p12 = scmp.lt.s32.totalorder %s442_s18, %s442_s18 }
  0x1b   :  { %p323_p11 = scmp.ne.s32.totalorder %s442_s18, %s322_s10  ;;  %p328_p13 = scmp.lt.s32.totalorder %s322_s10, %s322_s10 }
  0x1d   :  { %p329_p0 = por %p328_p13, %p327_p12 }
  0x1f   :  { %p330_p1 = pnand %p329_p0, %p323_p11 }
  0x21   :  { %333 = shalt.err (!%p330_p1)
}
  0x22   :  { %s410_s1 = smov 64   ;;  %s411_s11 = smov 4  }
  0x23   :  { %24 = dma.hbm_to_vmem [thread:$0]  %s513_s0, 128, %s442_s18, [#allocation3], %s410_s1, %s410_s1, %s411_s11  }
  0x24   :  { %s412_s14 = smov [#allocation7]   ;;  %s413_s16 = smov [#allocation8]  }
  0x25   :  { %s40_s15 = sshll.u32 %s412_s14, 4  ;;  %s53_s17 = sshll.u32 %s413_s16, 4  ;;  %s41_s15 = int_to_ptr.vmem [resolvable:$true] %s40_s15  ;;  %s54_s17 = int_to_ptr.vmem [resolvable:$true] %s53_s17 }
  0x26   :  { %s334_s21 = scalar_lea.hbm %s515_s2, 512 }
  0x27   :  { %p335_p2 = scmp.ne.s32.totalorder %s515_s2, %s334_s21  ;;  %p338_p3 = scmp.lt.u32.totalorder %s334_s21, %s515_s2 }
  0x29   :  { %p340_p4 = pnand %p338_p3, %p335_p2 }
  0x2b   :  { %343 = shalt.err (!%p340_p4)
}
  0x2c   :  { %s344_s0 = scalar_lea.vmem %s41_s15, 512  ;;  %p349_p6 = scmp.lt.s32.totalorder %s41_s15, %s41_s15 }
  0x2d   :  { %p345_p5 = scmp.ne.s32.totalorder %s41_s15, %s344_s0  ;;  %p350_p7 = scmp.lt.s32.totalorder %s344_s0, %s344_s0 }
  0x2f   :  { %p351_p8 = por %p350_p7, %p349_p6 }
  0x31   :  { %p352_p9 = pnand %p351_p8, %p345_p5 }
  0x33   :  { %355 = shalt.err (!%p352_p9)
}
  0x34   :  { %46 = dma.hbm_to_vmem [thread:$0]  %s515_s2, 512, %s41_s15, [#allocation6], %s410_s1, %s410_s1, %s411_s11  }
  0x35   :  { %s356_s29 = scalar_lea.hbm %s516_s3, 16 }
  0x36   :  { %p357_p10 = scmp.ne.s32.totalorder %s516_s3, %s356_s29  ;;  %p360_p11 = scmp.lt.u32.totalorder %s356_s29, %s516_s3 }
  0x38   :  { %p362_p12 = pnand %p360_p11, %p357_p10 }
  0x3a   :  { %365 = shalt.err (!%p362_p12)
}
  0x3b   :  { %s366_s8 = scalar_lea.vmem %s54_s17, 16  ;;  %s370_s9 = scalar_lea.vmem %s54_s17, 32 }
  0x3c   :  { %p367_p13 = scmp.ne.s32.totalorder %s54_s17, %s366_s8  ;;  %p371_p0 = scmp.lt.s32.totalorder %s54_s17, %s54_s17 }
  0x3d   :  { %p372_p1 = scmp.lt.s32.totalorder %s370_s9, %s366_s8 }
  0x3f   :  { %p373_p2 = por %p372_p1, %p371_p0 }
  0x41   :  { %p374_p3 = pnand %p373_p2, %p367_p13 }
  0x43   :  { %377 = shalt.err (!%p374_p3)
}
  0x44   :  { %56 = dma.hbm_to_vmem [thread:$0]  %s516_s3, 16, %s54_s17, [#allocation9]  }
  0x45   :  { %400 = dma.done.wait [#allocation3], 128  }
  0x46   :  { %401 = vsyncadd [#allocation3], 4294967168 }
  0x47   :  { %402 = dma.done.wait [#allocation6], 544  }
  0x48   :  { %403 = vsyncadd [#allocation6], 4294966752 }
  0x49   :  { %404 = dma.done.wait [#allocation9], 16  }
  0x4a   :  { %405 = vsyncadd [#allocation9], 4294967280  ;;  %v414_v0 = vmov 0.0   ;;  %vm415_vm0 = vmmov 0   ;;  %v286_v1 = vld [vmem:[#allocation7 + $0x10] sm:$0xff]   ;;  %v287_v2 = vld [vmem:[#allocation7] sm:$0xff]  }
  0x4b   :  { %261 = vmatprep.subr.bf16.mxu0 %v414_v0  ;;  %269 = vmatprep.subr.bf16.mxu1 %v414_v0  ;;  %v288_v3 = vld [vmem:[#allocation7 + $0x18] sm:$0xff]   ;;  %vm74_vm1 = vcmask 261120   ;;  %v289_v8 = vld [vmem:[#allocation7 + $0x8] sm:$0xff]   ;;  %vm160_vm2 = vcmask 1041409   ;;  %v250_v35 = vld [vmem:[#allocation8] ss:$0 sm:$0xff] }
  0x4c   :  { %265 = vmatprep.mubr.msk.bf16.mxu0 %vm415_vm0, %v414_v0  ;;  %273 = vmatprep.mubr.msk.bf16.mxu1 %vm415_vm0, %v414_v0  ;;  %v252_v4 = vld [vmem:[#allocation2] sm:$0xff]   ;;  %v89_v5 = vld [vmem:[#allocation5] sm:$0x3]  ;;  %s416_s3 = smov [#allocation10]  }
  0x4d   :  { %262 = vmatpush3.bf16.msra.mxu0 %v286_v1  ;;  %270 = vmatpush3.bf16.msra.mxu1 %v287_v2  ;;  %v253_v6 = vunpack.c.l.bf16 %v252_v4  ;;  %v254_v7 = vunpack.c.h.bf16 %v252_v4  ;;  %v96_v9 = vpack.c.bf16 %v89_v5, %v89_v5  ;;  %s233_s1 = sshll.u32 %s416_s3, 4  ;;  %s234_s1 = int_to_ptr.vmem [resolvable:$true] %s233_s1 }
  0x4e   :  { %263 = vmatprep.subr.bf16.mxu0 %v414_v0  ;;  %271 = vmatprep.subr.bf16.mxu1 %v414_v0  ;;  %s378_s11 = scalar_lea.vmem %s234_s1, 32  ;;  %p383_p5 = scmp.lt.s32.totalorder %s234_s1, %s234_s1 }
  0x4f   :  { %v75_v10 = vsel %vm74_vm1, %v253_v6, 0.0  ;;  %v82_v11 = vsel %vm74_vm1, %v254_v7, 0.0  ;;  %p379_p4 = scmp.ne.s32.totalorder %s234_s1, %s378_s11  ;;  %p384_p6 = scmp.lt.s32.totalorder %s378_s11, %s378_s11 }
  0x50   :  { %v76_v12 = vrot.slane %v75_v10, 4  ;;  %v83_v13 = vrot.slane %v82_v11, 4 }
  0x51   :  { %264 = vmatpush3.bf16.msra.mxu0 %v288_v3  ;;  %272 = vmatpush3.bf16.msra.mxu1 %v289_v8  ;;  %p385_p7 = por %p384_p6, %p383_p5 }
  0x52   :  { %v77_v14 = vadd.f32 %v76_v12, %v75_v10  ;;  %v84_v15 = vadd.f32 %v83_v13, %v82_v11 }
  0x53   :  { %p386_p8 = pnand %p385_p7, %p379_p4 }
  0x54   :  { %266 = vmatmul.mubr.msk.bf16.vlgmr.msra.gmra.mrb[0].mxu0 %vm74_vm1, %v96_v9  ;;  %v78_v16 = vrot.slane %v77_v14, 2  ;;  %v85_v17 = vrot.slane %v84_v15, 2 }
  0x56   :  { %v79_v18 = vadd.f32 %v78_v16, %v77_v14  ;;  %v86_v19 = vadd.f32 %v85_v17, %v84_v15 }
  0x58   :  { %v80_v20 = vrot.slane %v79_v18, 1  ;;  %v87_v21 = vrot.slane %v86_v19, 1 }
  0x5a   :  { %v81_v22 = vadd.f32 %v80_v20, %v79_v18  ;;  %v88_v23 = vadd.f32 %v87_v21, %v86_v19 }
  0x5c   :  { %v90_v24 = vpack.c.bf16 %v81_v22, %v81_v22  ;;  %v91_v25 = vpack.c.bf16 %v88_v23, %v88_v23 }
  0x5e   :  { %v158_v26 = vunpack.c.l.b16 %v90_v24  ;;  %v159_v27 = vunpack.c.l.b16 %v91_v25 }
  0x60   :  { %v161_v28 = vsel %vm160_vm2, %v159_v27, %v158_v26 }
  0x61   :  { %v162_v29 = vpack.c.b16 %v161_v28, %v161_v28 }
  0x63   :  { %274 = vmatmul.mubr.msk.bf16.vlgmr.msra.gmra.mrb[0].mxu1 %vm74_vm1, %v162_v29 }
 0x127   :  { %v150_v30 = vpop.f32.mrb[0].mxu0 }
 0x128   :  { %v267_v31 = vpop.f32.mrb[1].mxu0 }
 0x129   :  { %v153_v32 = vpop.f32.mrb[2].mxu0 }
 0x12a   :  { %v268_v33 = vpop.f32.mrb[3].mxu0 }
 0x136   :  { %v212_v34 = vpop.f32.mrb[0].mxu1 }
 0x137   :  { %v213_v36 = vadd.f32 %v212_v34, %v150_v30  ;;  %v275_v37 = vpop.f32.mrb[1].mxu1 }
 0x138   :  { %v215_v38 = vpop.f32.mrb[2].mxu1 }
 0x139   :  { %v225_v39 = vadd.f32 %v250_v35, %v213_v36  ;;  %v276_v40 = vpop.f32.mrb[3].mxu1 }
 0x13b   :  { %226 = vst [vmem:[#allocation10] sm:$0x3] %v225_v39 }
 0x13c   :  { %389 = shalt.err (!%p386_p8)
}
 0x13d   :  { %s390_s14 = scalar_lea.hbm %s517_s4, 32 }
 0x13e   :  { %p391_p9 = scmp.ne.s32.totalorder %s517_s4, %s390_s14  ;;  %p394_p10 = scmp.lt.u32.totalorder %s390_s14, %s517_s4 }
 0x140   :  { %p396_p11 = pnand %p394_p10, %p391_p9 }
 0x142   :  { %399 = shalt.err (!%p396_p11)
}
 0x143   :  { %236 = dma.vmem_to_hbm [thread:$0]  %s234_s1, 32, %s517_s4, [#allocation4]  }
 0x144   :  { %406 = dma.done.wait [#allocation4], 32  }
 0x145   :  { %407 = vsyncadd [#allocation4], 4294967264 }
 0x146   :  { %240 = vsyncpa [#allocation3], 1 }
 0x147   :  { %241 = vsyncpa [#allocation6], 1 }
 0x148   :  { %242 = vsyncpa [#allocation9], 1 }
 0x149   :  { %243 = vsyncpa [#allocation4], 1 }

</bundles_post_ra>
